<compile_context>
chip_gen: v7x
topology: tpu7x:2x2x1
jax: 0.10.0
libtpu: 0.0.40
codegen_flags: <defaults>
</compile_context>

<pallas_src>
import jax
import jax.numpy as jnp
from jax.experimental import pallas as pl
from jax.experimental.pallas import tpu as pltpu

LANE = 128


def _round8(n):
    return ((n + 7) // 8) * 8


def _pad_block(x, rows, lanes=LANE):
    """Embed a small 2D array into a zero (rows, lanes) f32 block."""
    assert x.shape[0] <= rows and x.shape[1] <= lanes, x.shape
    buf = jnp.zeros((rows, lanes), jnp.float32)
    return buf.at[:x.shape[0], :x.shape[1]].set(x.astype(jnp.float32))


def fold_and_pack(params, spatial_hw):
    """One-time parameter prep (call once; NOT in the per-step path).

    Folds the branch FC layers into the classifier (exact: no nonlinearity in
    between) and packs every weight/bias into one lane-dense f32 slab.
    """
    C, Hc = params['w_conv'].shape
    D, Hr = params['w_ih'].shape
    K = params['b_cls'].shape[1]
    assert Hc <= LANE and Hr <= LANE and 2 * K <= LANE and C <= LANE and D <= LANE, \
        "branch widths / channels must fit a single 128-lane tile"
    assert params['w_hh'].shape == (Hr, Hr)

    w_cls = params['w_cls']                                        # (2K, K)
    wc = (params['w_fc_cnn'] @ w_cls[:K, :]) / float(spatial_hw)   # (Hc, K), mean-pool folded
    wr = params['w_fc_rnn'] @ w_cls[K:, :]                         # (Hr, K)
    b_fused = (params['b_fc_cnn'] @ w_cls[:K, :]
               + params['b_fc_rnn'] @ w_cls[K:, :]
               + params['b_cls'])                                  # (1, K)

    Cp, Dp, Hrp = _round8(C), _round8(D), _round8(Hr)
    off, r = {}, 0
    for name, rows in (('w_conv', Cp), ('b_conv', 8), ('w_ih', Dp),
                       ('b_rnn', 8), ('w_hh', Hrp), ('w_cat', 2 * LANE),
                       ('b_cls', 8)):
        off[name] = r
        r += rows

    slab = jnp.concatenate([
        _pad_block(params['w_conv'], Cp),   # rows 0:C hold (C, Hc)
        _pad_block(params['b_conv'], 8),
        _pad_block(params['w_ih'], Dp),     # rows 0:D hold (D, Hr)
        _pad_block(params['b_rnn'], 8),
        _pad_block(params['w_hh'], Hrp),    # (Hr, Hr) in lanes 0:Hr
        _pad_block(wc, LANE),               # w_cat rows   0:128  (CNN half)
        _pad_block(wr, LANE),               # w_cat rows 128:256  (RNN half)
        _pad_block(b_fused, 8),
    ], axis=0)
    assert slab.shape == (r, LANE)
    return slab, dict(C=C, D=D, Hc=Hc, Hr=Hr, K=K, off=off)


def make_ensemble_forward(slab, meta):
    """Build a jitted forward closure: (x_cnn NCHW, x_rnn BTD) -> (B, K) logits."""
    C, D, Hr, K = meta['C'], meta['D'], meta['Hr'], meta['K']
    off = meta['off']

    def kernel(xc_ref, xr_ref, p_ref, out_ref):
        B, _, _ = xc_ref.shape
        T = xr_ref.shape[0] // B

        # Static slices of the packed VMEM slab (free).
        w_conv = p_ref[off['w_conv']:off['w_conv'] + C, :]        # (C, 128)
        b_conv = p_ref[off['b_conv']:off['b_conv'] + 1, :]        # (1, 128)
        w_ih   = p_ref[off['w_ih']:off['w_ih'] + D, :]            # (D, 128)
        b_rnn  = p_ref[off['b_rnn']:off['b_rnn'] + 1, :]          # (1, 128)
        w_hh   = p_ref[off['w_hh']:off['w_hh'] + Hr, :]           # (Hr, 128)
        w_cat  = p_ref[off['w_cat']:off['w_cat'] + 2 * LANE, :]   # (256, 128)
        b_cls  = p_ref[off['b_cls']:off['b_cls'] + 1, :]          # (1, 128)

        # ---- CNN branch: 1x1 conv as per-batch transposed-LHS matmul over C,
        #      ReLU, sum-pool over positions (1/HW is folded into w_cat). ----
        pooled_rows = []
        for b in range(B):                                        # B=2, static unroll
            xcb = xc_ref[b]                                       # (C, HW) lane-dense
            s = jax.lax.dot_general(
                xcb, w_conv, dimension_numbers=(((0,), (0,)), ((), ())),
                preferred_element_type=jnp.float32)               # (HW, 128)
            hcb = jnp.maximum(s + b_conv, 0.0)                    # pad lanes stay 0
            pooled_rows.append(jnp.sum(hcb, axis=0, keepdims=True))  # (1, 128)
        pooled = jnp.concatenate(pooled_rows, axis=0)             # (B, 128)

        # ---- RNN branch: input projection hoisted; time-major layout gives a
        #      contiguous (B,128) sublane pair per step; K=Hr recurrence. ----
        xproj = (jnp.dot(xr_ref[...], w_ih, preferred_element_type=jnp.float32)
                 + b_rnn)                                         # (T*B, 128)
        h_t = jnp.zeros((B, LANE), jnp.float32)
        for t in range(T):                                        # static unroll
            x_t = xproj[t * B:(t + 1) * B, :]                     # contiguous rows
            h_t = jnp.tanh(x_t + jnp.dot(h_t[:, :Hr], w_hh,
                                         preferred_element_type=jnp.float32))

        # ---- fused classifier: single MXU push over stacked [wc; wr]. ----
        cat = jnp.concatenate([pooled, h_t], axis=1)              # (B, 256)
        out_ref[...] = (jnp.dot(cat, w_cat, preferred_element_type=jnp.float32)
                        + b_cls)                                  # (B, 128), lanes K.. = 0

    vmem = pl.BlockSpec(memory_space=pltpu.MemorySpace.VMEM)

    @jax.jit
    def fwd(x_cnn_nchw, x_rnn, slab_arg):
        B, Cx, H, W = x_cnn_nchw.shape
        _, T, Dx = x_rnn.shape
        xc = x_cnn_nchw.reshape(B, Cx, H * W)                     # free bitcast, HW on lanes
        xr = jnp.transpose(x_rnn, (1, 0, 2)).reshape(T * B, Dx)   # time-major
        out_pad = pl.pallas_call(
            kernel,
            out_shape=jax.ShapeDtypeStruct((B, LANE), jnp.float32),
            in_specs=[vmem, vmem, vmem],
            out_specs=vmem,
        )(xc, xr, slab_arg)
        return out_pad[:, :K]

    return lambda x_cnn, x_rnn: fwd(x_cnn, x_rnn, slab)


def ensemble_reference(x_cnn_nchw, x_rnn, params):
    """Pure-JAX reference mirroring the (unfused) PyTorch forward."""
    hi = jax.lax.Precision.HIGHEST
    B, C, H, Wsp = x_cnn_nchw.shape
    xc = jnp.transpose(x_cnn_nchw, (0, 2, 3, 1)).reshape(B, H * Wsp, C)
    h = jnp.maximum(jnp.einsum('bpc,ch->bph', xc, params['w_conv'], precision=hi)
                    + params['b_conv'], 0.0)
    out_cnn = (jnp.dot(jnp.mean(h, axis=1), params['w_fc_cnn'], precision=hi)
               + params['b_fc_cnn'])

    h_t = jnp.zeros((B, params['w_hh'].shape[0]), jnp.float32)
    for t in range(x_rnn.shape[1]):
        h_t = jnp.tanh(jnp.dot(x_rnn[:, t, :], params['w_ih'], precision=hi)
                       + jnp.dot(h_t, params['w_hh'], precision=hi)
                       + params['b_rnn'])
    out_rnn = jnp.dot(h_t, params['w_fc_rnn'], precision=hi) + params['b_fc_rnn']

    out = jnp.concatenate([out_cnn, out_rnn], axis=1)
    return jnp.dot(out, params['w_cls'], precision=hi) + params['b_cls']


if __name__ == "__main__":
    # Small shapes consistent with the module's forward.
    B, Cin, H, W = 2, 4, 16, 16        # x_cnn: NCHW
    T, D = 8, 32                       # x_rnn: (B, T, D), batch_first
    Hc, Hr = 32, 32                    # hidden widths of the two branches
    K = 8                              # num_classes

    key = jax.random.PRNGKey(0)
    ks = jax.random.split(key, 12)

    x_cnn = jax.random.normal(ks[0], (B, Cin, H, W), jnp.float32)
    x_rnn = jax.random.normal(ks[1], (B, T, D), jnp.float32)

    params = {
        'w_conv':   0.1 * jax.random.normal(ks[2], (Cin, Hc), jnp.float32),
        'b_conv':   0.1 * jax.random.normal(ks[3], (1, Hc), jnp.float32),
        'w_fc_cnn': 0.1 * jax.random.normal(ks[4], (Hc, K), jnp.float32),
        'b_fc_cnn': 0.1 * jax.random.normal(ks[5], (1, K), jnp.float32),
        'w_ih':     0.1 * jax.random.normal(ks[6], (D, Hr), jnp.float32),
        'w_hh':     0.1 * jax.random.normal(ks[7], (Hr, Hr), jnp.float32),
        'b_rnn':    0.1 * jax.random.normal(ks[8], (1, Hr), jnp.float32),
        'w_fc_rnn': 0.1 * jax.random.normal(ks[9], (Hr, K), jnp.float32),
        'b_fc_rnn': 0.1 * jax.random.normal(ks[10], (1, K), jnp.float32),
        'w_cls':    0.1 * jax.random.normal(ks[11], (2 * K, K), jnp.float32),
        'b_cls':    jnp.zeros((1, K), jnp.float32),
    }

    # One-time parameter folding/packing (init-time), then a jitted forward.
    slab, meta = fold_and_pack(params, H * W)
    forward = make_ensemble_forward(slab, meta)

    out = jax.block_until_ready(forward(x_cnn, x_rnn))
    ref = ensemble_reference(x_cnn, x_rnn, params)

    assert out.shape == (B, K), out.shape
    assert jnp.allclose(out, ref, atol=1e-4, rtol=1e-4), (out, ref)
    print("KERNEL_OK")
</pallas_src>

<mosaic_0001>
module attributes {stable_mosaic.version = 11 : i64} {
  func.func @kernel(%arg0: memref<2x4x256xf32, #tpu.memory_space<vmem>>, %arg1: memref<16x32xf32, #tpu.memory_space<vmem>>, %arg2: memref<352x128xf32, #tpu.memory_space<vmem>>, %arg3: memref<2x128xf32, #tpu.memory_space<vmem>>) attributes {dimension_semantics = [], scalar_prefetch = 0 : i64, scratch_operands = 0 : i64, tpu.core_type = #tpu.core_type<tc>} {
    %c0 = arith.constant 0 : index
    %c0_0 = arith.constant 0 : index
    %0 = vector.load %arg2[%c0, %c0_0] : memref<352x128xf32, #tpu.memory_space<vmem>>, vector<4x128xf32>
    %c8 = arith.constant 8 : index
    %c0_1 = arith.constant 0 : index
    %1 = vector.load %arg2[%c8, %c0_1] : memref<352x128xf32, #tpu.memory_space<vmem>>, vector<1x128xf32>
    %c16 = arith.constant 16 : index
    %c0_2 = arith.constant 0 : index
    %2 = vector.load %arg2[%c16, %c0_2] : memref<352x128xf32, #tpu.memory_space<vmem>>, vector<32x128xf32>
    %c48 = arith.constant 48 : index
    %c0_3 = arith.constant 0 : index
    %3 = vector.load %arg2[%c48, %c0_3] : memref<352x128xf32, #tpu.memory_space<vmem>>, vector<1x128xf32>
    %c56 = arith.constant 56 : index
    %c0_4 = arith.constant 0 : index
    %4 = vector.load %arg2[%c56, %c0_4] : memref<352x128xf32, #tpu.memory_space<vmem>>, vector<32x128xf32>
    %c88 = arith.constant 88 : index
    %c0_5 = arith.constant 0 : index
    %5 = vector.load %arg2[%c88, %c0_5] : memref<352x128xf32, #tpu.memory_space<vmem>>, vector<256x128xf32>
    %c344 = arith.constant 344 : index
    %c0_6 = arith.constant 0 : index
    %6 = vector.load %arg2[%c344, %c0_6] : memref<352x128xf32, #tpu.memory_space<vmem>>, vector<1x128xf32>
    %c0_7 = arith.constant 0 : index
    %c0_8 = arith.constant 0 : index
    %c0_9 = arith.constant 0 : index
    %7 = vector.load %arg0[%c0_7, %c0_8, %c0_9] : memref<2x4x256xf32, #tpu.memory_space<vmem>>, vector<1x4x256xf32>
    %8 = vector.shape_cast %7 : vector<1x4x256xf32> to vector<4x256xf32>
    %cst = arith.constant dense<0.000000e+00> : vector<256x128xf32>
    %9 = tpu.matmul %8, %0, %cst {dimension_numbers = #tpu.dot_dimension_numbers<[0], [0], [1], [1], [0, 1, 1, 1], [], []>} : vector<4x256xf32>, vector<4x128xf32>, vector<256x128xf32> -> vector<256x128xf32>
    %10 = vector.broadcast %1 : vector<1x128xf32> to vector<256x128xf32>
    %11 = arith.addf %9, %10 : vector<256x128xf32>
    %cst_10 = arith.constant 0.000000e+00 : f32
    %12 = vector.broadcast %cst_10 : f32 to vector<256x128xf32>
    %13 = arith.maximumf %11, %12 : vector<256x128xf32>
    %cst_11 = arith.constant dense<0.000000e+00> : vector<128xf32>
    %14 = vector.multi_reduction <add>, %13, %cst_11 [0] : vector<256x128xf32> to vector<128xf32>
    %15 = vector.shape_cast %14 : vector<128xf32> to vector<1x128xf32>
    %c1 = arith.constant 1 : index
    %c0_12 = arith.constant 0 : index
    %c0_13 = arith.constant 0 : index
    %16 = vector.load %arg0[%c1, %c0_12, %c0_13] : memref<2x4x256xf32, #tpu.memory_space<vmem>>, vector<1x4x256xf32>
    %17 = vector.shape_cast %16 : vector<1x4x256xf32> to vector<4x256xf32>
    %cst_14 = arith.constant dense<0.000000e+00> : vector<256x128xf32>
    %18 = tpu.matmul %17, %0, %cst_14 {dimension_numbers = #tpu.dot_dimension_numbers<[0], [0], [1], [1], [0, 1, 1, 1], [], []>} : vector<4x256xf32>, vector<4x128xf32>, vector<256x128xf32> -> vector<256x128xf32>
    %19 = vector.broadcast %1 : vector<1x128xf32> to vector<256x128xf32>
    %20 = arith.addf %18, %19 : vector<256x128xf32>
    %cst_15 = arith.constant 0.000000e+00 : f32
    %21 = vector.broadcast %cst_15 : f32 to vector<256x128xf32>
    %22 = arith.maximumf %20, %21 : vector<256x128xf32>
    %cst_16 = arith.constant dense<0.000000e+00> : vector<128xf32>
    %23 = vector.multi_reduction <add>, %22, %cst_16 [0] : vector<256x128xf32> to vector<128xf32>
    %24 = vector.shape_cast %23 : vector<128xf32> to vector<1x128xf32>
    %25 = tpu.concatenate %15, %24 in 0 : vector<1x128xf32>, vector<1x128xf32> -> vector<2x128xf32>
    %c0_17 = arith.constant 0 : index
    %c0_18 = arith.constant 0 : index
    %26 = vector.load %arg1[%c0_17, %c0_18] : memref<16x32xf32, #tpu.memory_space<vmem>>, vector<16x32xf32>
    %cst_19 = arith.constant dense<0.000000e+00> : vector<16x128xf32>
    %27 = tpu.matmul %26, %2, %cst_19 {dimension_numbers = #tpu.dot_dimension_numbers<[1], [0], [0], [1], [0, 0, 1, 1], [], []>} : vector<16x32xf32>, vector<32x128xf32>, vector<16x128xf32> -> vector<16x128xf32>
    %28 = vector.broadcast %3 : vector<1x128xf32> to vector<16x128xf32>
    %29 = arith.addf %27, %28 : vector<16x128xf32>
    %cst_20 = arith.constant 0.000000e+00 : f32
    %30 = vector.broadcast %cst_20 : f32 to vector<2x128xf32>
    %31 = vector.extract_strided_slice %29 {offsets = [0, 0], sizes = [2, 128], strides = [1, 1]} : vector<16x128xf32> to vector<2x128xf32>
    %32 = vector.extract_strided_slice %30 {offsets = [0, 0], sizes = [2, 32], strides = [1, 1]} : vector<2x128xf32> to vector<2x32xf32>
    %cst_21 = arith.constant dense<0.000000e+00> : vector<2x128xf32>
    %33 = tpu.matmul %32, %4, %cst_21 {dimension_numbers = #tpu.dot_dimension_numbers<[1], [0], [0], [1], [0, 0, 1, 1], [], []>} : vector<2x32xf32>, vector<32x128xf32>, vector<2x128xf32> -> vector<2x128xf32>
    %34 = arith.addf %31, %33 : vector<2x128xf32>
    %35 = math.tanh %34 : vector<2x128xf32>
    %36 = vector.extract_strided_slice %29 {offsets = [2, 0], sizes = [2, 128], strides = [1, 1]} : vector<16x128xf32> to vector<2x128xf32>
    %37 = vector.extract_strided_slice %35 {offsets = [0, 0], sizes = [2, 32], strides = [1, 1]} : vector<2x128xf32> to vector<2x32xf32>
    %cst_22 = arith.constant dense<0.000000e+00> : vector<2x128xf32>
    %38 = tpu.matmul %37, %4, %cst_22 {dimension_numbers = #tpu.dot_dimension_numbers<[1], [0], [0], [1], [0, 0, 1, 1], [], []>} : vector<2x32xf32>, vector<32x128xf32>, vector<2x128xf32> -> vector<2x128xf32>
    %39 = arith.addf %36, %38 : vector<2x128xf32>
    %40 = math.tanh %39 : vector<2x128xf32>
    %41 = vector.extract_strided_slice %29 {offsets = [4, 0], sizes = [2, 128], strides = [1, 1]} : vector<16x128xf32> to vector<2x128xf32>
    %42 = vector.extract_strided_slice %40 {offsets = [0, 0], sizes = [2, 32], strides = [1, 1]} : vector<2x128xf32> to vector<2x32xf32>
    %cst_23 = arith.constant dense<0.000000e+00> : vector<2x128xf32>
    %43 = tpu.matmul %42, %4, %cst_23 {dimension_numbers = #tpu.dot_dimension_numbers<[1], [0], [0], [1], [0, 0, 1, 1], [], []>} : vector<2x32xf32>, vector<32x128xf32>, vector<2x128xf32> -> vector<2x128xf32>
    %44 = arith.addf %41, %43 : vector<2x128xf32>
    %45 = math.tanh %44 : vector<2x128xf32>
    %46 = vector.extract_strided_slice %29 {offsets = [6, 0], sizes = [2, 128], strides = [1, 1]} : vector<16x128xf32> to vector<2x128xf32>
    %47 = vector.extract_strided_slice %45 {offsets = [0, 0], sizes = [2, 32], strides = [1, 1]} : vector<2x128xf32> to vector<2x32xf32>
    %cst_24 = arith.constant dense<0.000000e+00> : vector<2x128xf32>
    %48 = tpu.matmul %47, %4, %cst_24 {dimension_numbers = #tpu.dot_dimension_numbers<[1], [0], [0], [1], [0, 0, 1, 1], [], []>} : vector<2x32xf32>, vector<32x128xf32>, vector<2x128xf32> -> vector<2x128xf32>
    %49 = arith.addf %46, %48 : vector<2x128xf32>
    %50 = math.tanh %49 : vector<2x128xf32>
    %51 = vector.extract_strided_slice %29 {offsets = [8, 0], sizes = [2, 128], strides = [1, 1]} : vector<16x128xf32> to vector<2x128xf32>
    %52 = vector.extract_strided_slice %50 {offsets = [0, 0], sizes = [2, 32], strides = [1, 1]} : vector<2x128xf32> to vector<2x32xf32>
    %cst_25 = arith.constant dense<0.000000e+00> : vector<2x128xf32>
    %53 = tpu.matmul %52, %4, %cst_25 {dimension_numbers = #tpu.dot_dimension_numbers<[1], [0], [0], [1], [0, 0, 1, 1], [], []>} : vector<2x32xf32>, vector<32x128xf32>, vector<2x128xf32> -> vector<2x128xf32>
    %54 = arith.addf %51, %53 : vector<2x128xf32>
    %55 = math.tanh %54 : vector<2x128xf32>
    %56 = vector.extract_strided_slice %29 {offsets = [10, 0], sizes = [2, 128], strides = [1, 1]} : vector<16x128xf32> to vector<2x128xf32>
    %57 = vector.extract_strided_slice %55 {offsets = [0, 0], sizes = [2, 32], strides = [1, 1]} : vector<2x128xf32> to vector<2x32xf32>
    %cst_26 = arith.constant dense<0.000000e+00> : vector<2x128xf32>
    %58 = tpu.matmul %57, %4, %cst_26 {dimension_numbers = #tpu.dot_dimension_numbers<[1], [0], [0], [1], [0, 0, 1, 1], [], []>} : vector<2x32xf32>, vector<32x128xf32>, vector<2x128xf32> -> vector<2x128xf32>
    %59 = arith.addf %56, %58 : vector<2x128xf32>
    %60 = math.tanh %59 : vector<2x128xf32>
    %61 = vector.extract_strided_slice %29 {offsets = [12, 0], sizes = [2, 128], strides = [1, 1]} : vector<16x128xf32> to vector<2x128xf32>
    %62 = vector.extract_strided_slice %60 {offsets = [0, 0], sizes = [2, 32], strides = [1, 1]} : vector<2x128xf32> to vector<2x32xf32>
    %cst_27 = arith.constant dense<0.000000e+00> : vector<2x128xf32>
    %63 = tpu.matmul %62, %4, %cst_27 {dimension_numbers = #tpu.dot_dimension_numbers<[1], [0], [0], [1], [0, 0, 1, 1], [], []>} : vector<2x32xf32>, vector<32x128xf32>, vector<2x128xf32> -> vector<2x128xf32>
    %64 = arith.addf %61, %63 : vector<2x128xf32>
    %65 = math.tanh %64 : vector<2x128xf32>
    %66 = vector.extract_strided_slice %29 {offsets = [14, 0], sizes = [2, 128], strides = [1, 1]} : vector<16x128xf32> to vector<2x128xf32>
    %67 = vector.extract_strided_slice %65 {offsets = [0, 0], sizes = [2, 32], strides = [1, 1]} : vector<2x128xf32> to vector<2x32xf32>
    %cst_28 = arith.constant dense<0.000000e+00> : vector<2x128xf32>
    %68 = tpu.matmul %67, %4, %cst_28 {dimension_numbers = #tpu.dot_dimension_numbers<[1], [0], [0], [1], [0, 0, 1, 1], [], []>} : vector<2x32xf32>, vector<32x128xf32>, vector<2x128xf32> -> vector<2x128xf32>
    %69 = arith.addf %66, %68 : vector<2x128xf32>
    %70 = math.tanh %69 : vector<2x128xf32>
    %71 = tpu.concatenate %25, %70 in 1 : vector<2x128xf32>, vector<2x128xf32> -> vector<2x256xf32>
    %cst_29 = arith.constant dense<0.000000e+00> : vector<2x128xf32>
    %72 = tpu.matmul %71, %5, %cst_29 {dimension_numbers = #tpu.dot_dimension_numbers<[1], [0], [0], [1], [0, 0, 1, 1], [], []>} : vector<2x256xf32>, vector<256x128xf32>, vector<2x128xf32> -> vector<2x128xf32>
    %73 = vector.broadcast %6 : vector<1x128xf32> to vector<2x128xf32>
    %74 = arith.addf %72, %73 : vector<2x128xf32>
    %c0_30 = arith.constant 0 : index
    %c0_31 = arith.constant 0 : index
    %75 = vector.load %arg3[%c0_30, %c0_31] : memref<2x128xf32, #tpu.memory_space<vmem>>, vector<2x128xf32>
    tpu.vector_store %arg3[%c0_30, %c0_31], %74 {strides = array<i32>} : memref<2x128xf32, #tpu.memory_space<vmem>>, vector<2x128xf32>,
    return
  }
}

</mosaic_0001>

<bundles_post_ra>
// kernel: fwd.1
= control target key start
LH: loop header
LB: loop body
LE: loop exit
PB: predicated region body
PF: predicated region fallthrough
CT: control target
= control target key end

     0   :  { %8 = vsyncpa [#allocation3], 0  ;;  %s2699_s0 = inlined_call_operand.vmem [shape: f32[2,4,256], index: 0, kind: input, shape index: {}]   ;;  %s2700_s1 = inlined_call_operand.vmem [shape: f32[16,32], index: 1, kind: input, shape index: {}]   ;;  %s2701_s2 = inlined_call_operand.hbm [shape: f32[352,128], index: 2, kind: input, shape index: {}]   ;;  %s2702_s3 = inlined_call_operand.hbm [shape: f32[2,128], index: 3, kind: output, shape index: {}]  }
   0x1   :  { %9 = vsyncpa [#allocation4], 0  ;;  %s2393_s12 = smov [#allocation2]   ;;  %s2345_s16 = scalar_lea.hbm %s2701_s2, 5632 }
   0x2   :  { %s19_s13 = sshll.u32 %s2393_s12, 4  ;;  %p2346_p0 = scmp.ne.s32.totalorder %s2701_s2, %s2345_s16  ;;  %s20_s13 = int_to_ptr.vmem [resolvable:$true] %s19_s13 }
   0x3   :  { %p2349_p1 = scmp.lt.u32.totalorder %s2345_s16, %s2701_s2 }
   0x5   :  { %p2351_p2 = pnand %p2349_p1, %p2346_p0 }
   0x7   :  { %2354 = shalt.err (!%p2351_p2)
}
   0x8   :  { %s2355_s21 = scalar_lea.vmem %s20_s13, 5632  ;;  %p2360_p4 = scmp.lt.s32.totalorder %s20_s13, %s20_s13 }
   0x9   :  { %p2356_p3 = scmp.ne.s32.totalorder %s20_s13, %s2355_s21  ;;  %p2361_p5 = scmp.lt.s32.totalorder %s2355_s21, %s2355_s21 }
   0xb   :  { %p2362_p6 = por %p2361_p5, %p2360_p4 }
   0xd   :  { %p2363_p7 = pnand %p2362_p6, %p2356_p3 }
   0xf   :  { %2366 = shalt.err (!%p2363_p7)
}
  0x10   :  { %s2394_s22 = smov 128   ;;  %s2395_s23 = smov 8  }
  0x11   :  { %25 = dma.hbm_to_vmem [thread:$0]  %s2701_s2, 5632, %s20_s13, [#allocation3], %s2394_s22, %s2394_s22, %s2395_s23  }
  0x12   :  { %2389 = dma.done.wait [#allocation3], 5632  }
  0x13   :  { %2390 = vsyncadd [#allocation3], 4294961664  ;;  %v73_v0 = vld [vmem:[%s2699_s0] sm:$0xff]  ;;  %vm242_vm0 = vcmask 1043456   ;;  %v1839_v3 = vld [vmem:[%s2699_s0 + $0x8] sm:$0xff]  ;;  %v2396_v5 = vmov 0.0|0.0  }
  0x14   :  { %81 = vxpose.xlu0.b32.start.end [1/1] (short) %v73_v0, 128  ;;  %v79_v1 = vcombine.high %v73_v0, %v73_v0  ;;  %v29_v2 = vld [vmem:[#allocation2] sm:$0xf]  ;;  %v543_v4 = vcombine.high %v1839_v3, %v1839_v3  ;;  %vm145_vm1 = vcmask 31744   ;;  %v31_v15 = vld [vmem:[#allocation2 + $0x10] sm:$0xff]  ;;  %v32_v16 = vld [vmem:[#allocation2 + $0x18] sm:$0xff]  ;;  %vm1007_vm2 = vcmask 261120  }
  0x15   :  { %2031 = vmatprep.subr.msk.mxu0 %vm242_vm0, %v29_v2  ;;  %2318 = vmatprep.subr.msk.mxu1 %vm242_vm0, %v29_v2  ;;  %v2450_v18 = vpack.c.bf16 %v32_v16, %v31_v15  ;;  %v36_v51 = vld [vmem:[#allocation2 + $0x38] sm:$0xff]  ;;  %v37_v52 = vld [vmem:[#allocation2 + $0x40] sm:$0xff]  ;;  %v38_v56 = vld [vmem:[#allocation2 + $0x48] sm:$0xff]  ;;  %vm2397_vm3 = vmmov 0   ;;  %vm999_vm4 = vcmask 1040384  }
  0x16   :  { %113 = vxpose.xlu1.b32.start.end [1/1] (short) %v79_v1, 128  ;;  %2032 = vmatpush3.msk.msra.mxu0 %vm242_vm0, %v29_v2  ;;  %v2490_v55 = vpack.c.bf16 %v37_v52, %v36_v51  ;;  %v39_v57 = vld [vmem:[#allocation2 + $0x50] sm:$0xff]  ;;  %v33_v59 = vld [vmem:[#allocation2 + $0x20] sm:$0xff]  ;;  %v34_v60 = vld [vmem:[#allocation2 + $0x28] sm:$0xff] }
  0x17   :  { %2081 = vmatprep.subr.msk.mxu0 %vm242_vm0, %v29_v2  ;;  %2319 = vmatpush3.msk.msra.mxu1 %vm242_vm0, %v29_v2  ;;  %v2496_v62 = vpack.c.bf16 %v39_v57, %v38_v56  ;;  %v2234_v0 = vpack.c.bf16 %v34_v60, %v33_v59 }
  0x18   :  { %2238 = vmatprep.subr.bf16.mxu1 %v2396_v5 }
  0x51   :  { %545 = vxpose.xlu0.b32.start.end [1/1] (short) %v1839_v3, 128  ;;  %v1001_v3 = vld [vmem:[%s2700_s1] sm:$0xff] }
  0x53   :  { %577 = vxpose.xlu1.b32.start.end [1/1] (short) %v543_v4, 128 }
  0x94   :  { %v97_v6 = vpop.trf.xlu0 }
  0x95   :  { %2033 = vmatprep.mubr.msk.f32.mxu0 %vm145_vm1, %v97_v6 }
  0x96   :  { %v129_v7 = vpop.trf.xlu1 }
  0x98   :  { %v98_v8 = vpop.trf.xlu0 }
  0x99   :  { %2034 = vmatmul.mubr.msk.f32.vlgmr.msra.gmra.mrb[0].mxu0 %vm145_vm1, %v98_v8 }
  0x9a   :  { %v130_v9 = vpop.trf.xlu1  ;;  %2082 = vmatpush3.msk.msra.mxu0 %vm242_vm0, %v29_v2 }
  0x9b   :  { %2231 = vmatprep.subr.bf16.mxu0 %v2450_v18 }
  0x9c   :  { %v99_v10 = vpop.trf.xlu0 }
  0x9d   :  { %2036 = vmatprep.mubr.msk.f32.mxu0 %vm145_vm1, %v99_v10 }
  0x9e   :  { %v131_v11 = vpop.trf.xlu1 }
  0xa0   :  { %v100_v12 = vpop.trf.xlu0 }
  0xa1   :  { %2037 = vmatmul.mubr.msk.f32.gmra.mrb[2].mxu0 %vm145_vm1, %v100_v12 }
  0xa2   :  { %v132_v13 = vpop.trf.xlu1 }
  0xa4   :  { %v101_v14 = vpop.trf.xlu0 }
  0xa5   :  { %2039 = vmatprep.mubr.msk.f32.mxu0 %vm145_vm1, %v101_v14 }
  0xa6   :  { %v133_v17 = vpop.trf.xlu1 }
  0xa8   :  { %v102_v19 = vpop.trf.xlu0 }
  0xa9   :  { %2040 = vmatmul.mubr.msk.f32.gmra.mrb[4].mxu0 %vm145_vm1, %v102_v19 }
  0xaa   :  { %v134_v20 = vpop.trf.xlu1 }
  0xac   :  { %v103_v21 = vpop.trf.xlu0 }
  0xad   :  { %2042 = vmatprep.mubr.msk.f32.mxu0 %vm145_vm1, %v103_v21 }
  0xae   :  { %v135_v22 = vpop.trf.xlu1 }
  0xb0   :  { %v104_v23 = vpop.trf.xlu0 }
  0xb1   :  { %2043 = vmatmul.mubr.msk.f32.gmra.mrb[6].mxu0 %vm145_vm1, %v104_v23 }
  0xb2   :  { %v136_v24 = vpop.trf.xlu1 }
  0xb4   :  { %v105_v25 = vpop.trf.xlu0 }
  0xb5   :  { %2045 = vmatprep.mubr.msk.f32.mxu0 %vm145_vm1, %v105_v25 }
  0xb6   :  { %v137_v26 = vpop.trf.xlu1 }
  0xb8   :  { %v106_v27 = vpop.trf.xlu0 }
  0xb9   :  { %2046 = vmatmul.mubr.msk.f32.gmra.mrb[8].mxu0 %vm145_vm1, %v106_v27 }
  0xba   :  { %v138_v28 = vpop.trf.xlu1 }
  0xbc   :  { %v107_v29 = vpop.trf.xlu0 }
  0xbd   :  { %2048 = vmatprep.mubr.msk.f32.mxu0 %vm145_vm1, %v107_v29 }
  0xbe   :  { %v139_v30 = vpop.trf.xlu1 }
  0xc0   :  { %v108_v31 = vpop.trf.xlu0 }
  0xc1   :  { %2049 = vmatmul.mubr.msk.f32.gmra.mrb[10].mxu0 %vm145_vm1, %v108_v31 }
  0xc2   :  { %v140_v32 = vpop.trf.xlu1 }
  0xc4   :  { %v109_v33 = vpop.trf.xlu0 }
  0xc5   :  { %2051 = vmatprep.mubr.msk.f32.mxu0 %vm145_vm1, %v109_v33 }
  0xc6   :  { %v141_v34 = vpop.trf.xlu1 }
  0xc8   :  { %v110_v35 = vpop.trf.xlu0 }
  0xc9   :  { %2052 = vmatmul.mubr.msk.f32.gmra.mrb[12].mxu0 %vm145_vm1, %v110_v35 }
  0xca   :  { %v142_v36 = vpop.trf.xlu1 }
  0xcc   :  { %v111_v37 = vpop.trf.xlu0 }
  0xcd   :  { %2054 = vmatprep.mubr.msk.f32.mxu0 %vm145_vm1, %v111_v37 }
  0xce   :  { %v143_v38 = vpop.trf.xlu1 }
  0xd0   :  { %v112_v39 = vpop.trf.xlu0 }
  0xd1   :  { %2055 = vmatmul.mubr.msk.f32.gmra.mrb[14].mxu0 %vm145_vm1, %v112_v39 }
  0xd2   :  { %2057 = vmatprep.mubr.msk.f32.mxu0 %vm145_vm1, %v129_v7  ;;  %v144_v40 = vpop.trf.xlu1  ;;  %v1002_v7 = vld [vmem:[%s2700_s1 + $0x8] sm:$0xff]  ;;  %s2399_s1 = smov [#allocation5]  }
  0xd3   :  { %s1796_s5 = sshll.u32 %s2399_s1, 4  ;;  %s1797_s5 = int_to_ptr.vmem [resolvable:$true] %s1796_s5 }
  0xd4   :  { %v561_v41 = vpop.trf.xlu0  ;;  %s2367_s6 = scalar_lea.vmem %s1797_s5, 32  ;;  %p2372_p9 = scmp.lt.s32.totalorder %s1797_s5, %s1797_s5 }
  0xd5   :  { %2058 = vmatmul.mubr.msk.f32.gmra.mrb[16].mxu0 %vm145_vm1, %v130_v9  ;;  %v2398_v9 = vmov 0.0   ;;  %p2368_p8 = scmp.ne.s32.totalorder %s1797_s5, %s2367_s6  ;;  %p2373_p10 = scmp.lt.s32.totalorder %s2367_s6, %s2367_s6 }
  0xd6   :  { %2060 = vmatprep.mubr.msk.f32.mxu0 %vm145_vm1, %v131_v11  ;;  %v2467_v42 = vpop.trf.xlu1 }
  0xd7   :  { %p2374_p11 = por %p2373_p10, %p2372_p9 }
  0xd8   :  { %v562_v43 = vpop.trf.xlu0 }
  0xd9   :  { %2061 = vmatmul.mubr.msk.f32.gmra.mrb[18].mxu0 %vm145_vm1, %v132_v13  ;;  %p2375_p12 = pnand %p2374_p11, %p2368_p8 }
  0xda   :  { %2063 = vmatprep.mubr.msk.f32.mxu0 %vm145_vm1, %v133_v17  ;;  %v2471_v44 = vpop.trf.xlu1 }
  0xdc   :  { %v563_v45 = vpop.trf.xlu0 }
  0xdd   :  { %2064 = vmatmul.mubr.msk.f32.gmra.mrb[20].mxu0 %vm145_vm1, %v134_v20 }
  0xde   :  { %2066 = vmatprep.mubr.msk.f32.mxu0 %vm145_vm1, %v135_v22  ;;  %v2475_v47 = vpop.trf.xlu1  ;;  %v2560_v22 = vld [vmem:[#allocation2 + $0x8] ss:$0 sm:$0xff] }
  0xe0   :  { %v564_v46 = vpop.trf.xlu0 }
  0xe1   :  { %2067 = vmatmul.mubr.msk.f32.gmra.mrb[22].mxu0 %vm145_vm1, %v136_v24 }
  0xe2   :  { %2069 = vmatprep.mubr.msk.f32.mxu0 %vm145_vm1, %v137_v26  ;;  %v2481_v49 = vpop.trf.xlu1 }
  0xe4   :  { %v565_v48 = vpop.trf.xlu0 }
  0xe5   :  { %2070 = vmatmul.mubr.msk.f32.gmra.mrb[24].mxu0 %vm145_vm1, %v138_v28 }
  0xe6   :  { %2072 = vmatprep.mubr.msk.f32.mxu0 %vm145_vm1, %v139_v30  ;;  %v2485_v54 = vpop.trf.xlu1 }
  0xe8   :  { %v566_v50 = vpop.trf.xlu0 }
  0xe9   :  { %2073 = vmatmul.mubr.msk.f32.gmra.mrb[26].mxu0 %vm145_vm1, %v140_v32 }
  0xea   :  { %2075 = vmatprep.mubr.msk.f32.mxu0 %vm145_vm1, %v141_v34  ;;  %v598_v61 = vpop.trf.xlu1 }
  0xec   :  { %v567_v53 = vpop.trf.xlu0 }
  0xed   :  { %2076 = vmatmul.mubr.msk.f32.gmra.mrb[28].mxu0 %vm145_vm1, %v142_v36  ;;  %2092 = vmatprep.mubr.msk.f32.mxu1 %vm145_vm1, %v567_v53 }
  0xee   :  { %2078 = vmatprep.mubr.msk.f32.mxu0 %vm145_vm1, %v143_v38  ;;  %v599_v2 = vpop.trf.xlu1 }
  0xf0   :  { %v568_v58 = vpop.trf.xlu0 }
  0xf1   :  { %2079 = vmatmul.mubr.msk.f32.gmra.mrb[30].mxu0 %vm145_vm1, %v144_v40  ;;  %2093 = vmatmul.mubr.msk.f32.vlgmr.msra.gmra.mrb[0].mxu1 %vm145_vm1, %v568_v58 }
  0xf2   :  { %2083 = vmatprep.mubr.msk.f32.mxu0 %vm145_vm1, %v561_v41  ;;  %2240 = vmatpush3.bf16.msra.mxu1 %v2490_v55  ;;  %v600_v6 = vpop.trf.xlu1 }
  0xf3   :  { %2241 = vmatprep.subr.bf16.mxu1 %v2396_v5 }
  0xf4   :  { %v569_v63 = vpop.trf.xlu0 }
  0xf5   :  { %2084 = vmatmul.mubr.msk.f32.vlgmr.msra.gmra.mrb[32].mxu0 %vm145_vm1, %v562_v43  ;;  %2095 = vmatprep.mubr.msk.f32.mxu1 %vm145_vm1, %v569_v63 }
  0xf6   :  { %2086 = vmatprep.mubr.msk.f32.mxu0 %vm145_vm1, %v563_v45  ;;  %2243 = vmatpush3.bf16.msra.mxu1 %v2496_v62  ;;  %v601_v11 = vpop.trf.xlu1 }
  0xf7   :  { %2233 = vmatpush3.bf16.msra.mxu0 %v2450_v18  ;;  %2250 = vmatprep.subr.bf16.mxu1 %v2396_v5 }
  0xf8   :  { %v570_v1 = vpop.trf.xlu0  ;;  %2235 = vmatprep.subr.bf16.mxu0 %v2234_v0 }
  0xf9   :  { %2087 = vmatmul.mubr.msk.f32.gmra.mrb[34].mxu0 %vm145_vm1, %v564_v46  ;;  %2096 = vmatmul.mubr.msk.f32.gmra.mrb[2].mxu1 %vm145_vm1, %v570_v1 }
  0xfa   :  { %2089 = vmatprep.mubr.msk.f32.mxu0 %vm145_vm1, %v565_v48  ;;  %v602_v13 = vpop.trf.xlu1 }
  0xfb   :  { %2237 = vmatpush3.bf16.msra.mxu0 %v2234_v0 }
  0xfc   :  { %v571_v4 = vpop.trf.xlu0  ;;  %2244 = vmatprep.subr.bf16.mxu0 %v2396_v5 }
  0xfd   :  { %2090 = vmatmul.mubr.msk.f32.gmra.mrb[36].mxu0 %vm145_vm1, %v566_v50  ;;  %2098 = vmatprep.mubr.msk.f32.mxu1 %vm145_vm1, %v571_v4 }
  0xfe   :  { %2139 = vmatprep.mubr.msk.f32.mxu0 %vm1007_vm2, %v1001_v3  ;;  %v603_v16 = vpop.trf.xlu1 }
 0x100   :  { %v572_v8 = vpop.trf.xlu0 }
 0x101   :  { %2099 = vmatmul.mubr.msk.f32.gmra.mrb[4].mxu1 %vm145_vm1, %v572_v8  ;;  %2140 = vmatmul.mubr.msk.f32.vlgmr.msra.gmra.mrb[38].mxu0 %vm1007_vm2, %v1002_v7 }
 0x102   :  { %2246 = vmatpush3.bf16.msra.mxu0 %v2490_v55  ;;  %2161 = vmatprep.mubr.msk.f32.mxu0 %vm2397_vm3, %v2398_v9  ;;  %v604_v17 = vpop.trf.xlu1 }
 0x103   :  { %2247 = vmatprep.subr.bf16.mxu0 %v2396_v5 }
 0x104   :  { %v573_v10 = vpop.trf.xlu0 }
 0x105   :  { %2101 = vmatprep.mubr.msk.f32.mxu1 %vm145_vm1, %v573_v10 }
 0x106   :  { %2249 = vmatpush3.bf16.msra.mxu0 %v2496_v62  ;;  %v605_v18 = vpop.trf.xlu1 }
 0x107   :  { %2256 = vmatprep.subr.bf16.mxu0 %v2396_v5 }
 0x108   :  { %v574_v12 = vpop.trf.xlu0 }
 0x109   :  { %2102 = vmatmul.mubr.msk.f32.gmra.mrb[6].mxu1 %vm145_vm1, %v574_v12 }
 0x10a   :  { %v606_v19 = vpop.trf.xlu1 }
 0x10c   :  { %v575_v14 = vpop.trf.xlu0 }
 0x10d   :  { %2104 = vmatprep.mubr.msk.f32.mxu1 %vm145_vm1, %v575_v14 }
 0x10e   :  { %v607_v20 = vpop.trf.xlu1 }
 0x110   :  { %v576_v15 = vpop.trf.xlu0 }
 0x111   :  { %2105 = vmatmul.mubr.msk.f32.gmra.mrb[8].mxu1 %vm145_vm1, %v576_v15 }
 0x112   :  { %2107 = vmatprep.mubr.msk.f32.mxu1 %vm145_vm1, %v2467_v42  ;;  %v608_v21 = vpop.trf.xlu1 }
 0x115   :  { %2108 = vmatmul.mubr.msk.f32.gmra.mrb[10].mxu1 %vm145_vm1, %v2471_v44 }
 0x116   :  { %2110 = vmatprep.mubr.msk.f32.mxu1 %vm145_vm1, %v2475_v47 }
 0x119   :  { %2111 = vmatmul.mubr.msk.f32.gmra.mrb[12].mxu1 %vm145_vm1, %v2481_v49 }
 0x11a   :  { %2113 = vmatprep.mubr.msk.f32.mxu1 %vm145_vm1, %v2485_v54 }
 0x11d   :  { %2114 = vmatmul.mubr.msk.f32.gmra.mrb[14].mxu1 %vm145_vm1, %v598_v61 }
 0x11e   :  { %2116 = vmatprep.mubr.msk.f32.mxu1 %vm145_vm1, %v599_v2 }
 0x121   :  { %2117 = vmatmul.mubr.msk.f32.gmra.mrb[16].mxu1 %vm145_vm1, %v600_v6 }
 0x122   :  { %2119 = vmatprep.mubr.msk.f32.mxu1 %vm145_vm1, %v601_v11 }
 0x125   :  { %2120 = vmatmul.mubr.msk.f32.gmra.mrb[18].mxu1 %vm145_vm1, %v602_v13 }
 0x126   :  { %2122 = vmatprep.mubr.msk.f32.mxu1 %vm145_vm1, %v603_v16 }
 0x129   :  { %2123 = vmatmul.mubr.msk.f32.gmra.mrb[20].mxu1 %vm145_vm1, %v604_v17 }
 0x12a   :  { %2125 = vmatprep.mubr.msk.f32.mxu1 %vm145_vm1, %v605_v18 }
 0x12d   :  { %2126 = vmatmul.mubr.msk.f32.gmra.mrb[22].mxu1 %vm145_vm1, %v606_v19 }
 0x12e   :  { %2128 = vmatprep.mubr.msk.f32.mxu1 %vm145_vm1, %v607_v20 }
 0x131   :  { %2129 = vmatmul.mubr.msk.f32.gmra.mrb[24].mxu1 %vm145_vm1, %v608_v21 }
 0x132   :  { %2150 = vmatprep.mubr.msk.f32.mxu1 %vm2397_vm3, %v2398_v9 }
 0x135   :  { %2151 = vmatmul.mubr.f32.vlgmr.msra.gmra.mrb[26].mxu1 %v2398_v9 }
 0x136   :  { %2252 = vmatpush3.bf16.msra.mxu1 %v2490_v55  ;;  %2172 = vmatprep.mubr.msk.f32.mxu1 %vm2397_vm3, %v2398_v9 }
 0x137   :  { %2253 = vmatprep.subr.bf16.mxu1 %v2396_v5 }
 0x13a   :  { %2255 = vmatpush3.bf16.msra.mxu1 %v2496_v62 }
 0x13b   :  { %2262 = vmatprep.subr.bf16.mxu1 %v2396_v5 }
 0x16c   :  { %v2035_v23 = vpop.f32.mrb[0].mxu0 }
 0x16d   :  { %v318_v24 = vadd.f32 %v2035_v23, %v2560_v22  ;;  %v312_v25 = vpop.f32.mrb[1].mxu0 }
 0x16e   :  { %v313_v26 = vadd.f32 %v2560_v22, %v312_v25 }
 0x16f   :  { %v472_v27 = vmax.f32 %v318_v24, 0.0 }
 0x170   :  { %v471_v28 = vmax.f32 %v313_v26, 0.0 }
 0x172   :  { %v503_v29 = vadd.f32 %v472_v27, %v471_v28 }
 0x174   :  { %v2038_v30 = vpop.f32.mrb[2].mxu0 }
 0x175   :  { %v322_v31 = vpop.f32.mrb[3].mxu0  ;;  %v328_v32 = vadd.f32 %v2038_v30, %v2560_v22 }
 0x176   :  { %v323_v33 = vadd.f32 %v2560_v22, %v322_v31 }
 0x177   :  { %v474_v35 = vmax.f32 %v328_v32, 0.0 }
 0x178   :  { %v473_v34 = vmax.f32 %v323_v33, 0.0 }
 0x17a   :  { %v504_v36 = vadd.f32 %v503_v29, %v473_v34 }
 0x17c   :  { %v2041_v37 = vpop.f32.mrb[4].mxu0  ;;  %v505_v38 = vadd.f32 %v504_v36, %v474_v35 }
 0x17d   :  { %v332_v39 = vpop.f32.mrb[5].mxu0  ;;  %v338_v40 = vadd.f32 %v2041_v37, %v2560_v22 }
 0x17e   :  { %v333_v41 = vadd.f32 %v2560_v22, %v332_v39 }
 0x17f   :  { %v476_v43 = vmax.f32 %v338_v40, 0.0 }
 0x180   :  { %v475_v42 = vmax.f32 %v333_v41, 0.0 }
 0x182   :  { %v506_v44 = vadd.f32 %v505_v38, %v475_v42 }
 0x184   :  { %v2044_v45 = vpop.f32.mrb[6].mxu0  ;;  %v507_v46 = vadd.f32 %v506_v44, %v476_v43 }
 0x185   :  { %v342_v47 = vpop.f32.mrb[7].mxu0  ;;  %v348_v48 = vadd.f32 %v2044_v45, %v2560_v22 }
 0x186   :  { %v343_v49 = vadd.f32 %v2560_v22, %v342_v47 }
 0x187   :  { %v478_v51 = vmax.f32 %v348_v48, 0.0 }
 0x188   :  { %v477_v50 = vmax.f32 %v343_v49, 0.0 }
 0x18a   :  { %v508_v52 = vadd.f32 %v507_v46, %v477_v50 }
 0x18c   :  { %v2047_v53 = vpop.f32.mrb[8].mxu0  ;;  %v509_v54 = vadd.f32 %v508_v52, %v478_v51 }
 0x18d   :  { %v352_v56 = vpop.f32.mrb[9].mxu0  ;;  %v358_v57 = vadd.f32 %v2047_v53, %v2560_v22 }
 0x18e   :  { %v353_v58 = vadd.f32 %v2560_v22, %v352_v56 }
 0x18f   :  { %v480_v60 = vmax.f32 %v358_v57, 0.0 }
 0x190   :  { %v479_v59 = vmax.f32 %v353_v58, 0.0 }
 0x192   :  { %v510_v61 = vadd.f32 %v509_v54, %v479_v59 }
 0x194   :  { %v2050_v63 = vpop.f32.mrb[10].mxu0  ;;  %v511_v0 = vadd.f32 %v510_v61, %v480_v60 }
 0x195   :  { %v362_v1 = vpop.f32.mrb[11].mxu0  ;;  %v368_v2 = vadd.f32 %v2050_v63, %v2560_v22 }
 0x196   :  { %v363_v3 = vadd.f32 %v2560_v22, %v362_v1 }
 0x197   :  { %v482_v6 = vmax.f32 %v368_v2, 0.0 }
 0x198   :  { %v481_v4 = vmax.f32 %v363_v3, 0.0 }
 0x19a   :  { %v512_v7 = vadd.f32 %v511_v0, %v481_v4 }
 0x19c   :  { %v2053_v8 = vpop.f32.mrb[12].mxu0  ;;  %v513_v10 = vadd.f32 %v512_v7, %v482_v6 }
 0x19d   :  { %v372_v11 = vpop.f32.mrb[13].mxu0  ;;  %v378_v12 = vadd.f32 %v2053_v8, %v2560_v22 }
 0x19e   :  { %v373_v13 = vadd.f32 %v2560_v22, %v372_v11 }
 0x19f   :  { %v484_v15 = vmax.f32 %v378_v12, 0.0 }
 0x1a0   :  { %v483_v14 = vmax.f32 %v373_v13, 0.0 }
 0x1a2   :  { %v514_v16 = vadd.f32 %v513_v10, %v483_v14 }
 0x1a4   :  { %v2056_v17 = vpop.f32.mrb[14].mxu0  ;;  %v515_v18 = vadd.f32 %v514_v16, %v484_v15 }
 0x1a5   :  { %v382_v19 = vpop.f32.mrb[15].mxu0  ;;  %v388_v20 = vadd.f32 %v2056_v17, %v2560_v22 }
 0x1a6   :  { %v383_v21 = vadd.f32 %v2560_v22, %v382_v19 }
 0x1a7   :  { %v486_v26 = vmax.f32 %v388_v20, 0.0 }
 0x1a8   :  { %v485_v23 = vmax.f32 %v383_v21, 0.0  ;;  %v2059_v24 = vpop.f32.mrb[16].mxu0 }
 0x1a9   :  { %v392_v25 = vpop.f32.mrb[17].mxu0  ;;  %v398_v28 = vadd.f32 %v2059_v24, %v2560_v22 }
 0x1aa   :  { %v516_v27 = vadd.f32 %v515_v18, %v485_v23  ;;  %v393_v29 = vadd.f32 %v2560_v22, %v392_v25 }
 0x1ab   :  { %v488_v34 = vmax.f32 %v398_v28, 0.0 }
 0x1ac   :  { %v487_v30 = vmax.f32 %v393_v29, 0.0  ;;  %v517_v31 = vadd.f32 %v516_v27, %v486_v26  ;;  %v2062_v32 = vpop.f32.mrb[18].mxu0 }
 0x1ad   :  { %v402_v33 = vpop.f32.mrb[19].mxu0  ;;  %v408_v36 = vadd.f32 %v2062_v32, %v2560_v22 }
 0x1ae   :  { %v518_v35 = vadd.f32 %v517_v31, %v487_v30  ;;  %v403_v37 = vadd.f32 %v2560_v22, %v402_v33 }
 0x1af   :  { %v490_v42 = vmax.f32 %v408_v36, 0.0 }
 0x1b0   :  { %v489_v38 = vmax.f32 %v403_v37, 0.0  ;;  %v519_v39 = vadd.f32 %v518_v35, %v488_v34  ;;  %v2065_v40 = vpop.f32.mrb[20].mxu0 }
 0x1b1   :  { %v412_v41 = vpop.f32.mrb[21].mxu0  ;;  %v418_v44 = vadd.f32 %v2065_v40, %v2560_v22 }
 0x1b2   :  { %v520_v43 = vadd.f32 %v519_v39, %v489_v38  ;;  %v413_v45 = vadd.f32 %v2560_v22, %v412_v41 }
 0x1b3   :  { %v492_v50 = vmax.f32 %v418_v44, 0.0 }
 0x1b4   :  { %v491_v46 = vmax.f32 %v413_v45, 0.0  ;;  %v521_v47 = vadd.f32 %v520_v43, %v490_v42  ;;  %v2068_v48 = vpop.f32.mrb[22].mxu0 }
 0x1b5   :  { %v422_v49 = vpop.f32.mrb[23].mxu0  ;;  %v428_v52 = vadd.f32 %v2068_v48, %v2560_v22 }
 0x1b6   :  { %v522_v51 = vadd.f32 %v521_v47, %v491_v46  ;;  %v423_v53 = vadd.f32 %v2560_v22, %v422_v49 }
 0x1b7   :  { %v494_v59 = vmax.f32 %v428_v52, 0.0 }
 0x1b8   :  { %v493_v54 = vmax.f32 %v423_v53, 0.0  ;;  %v523_v56 = vadd.f32 %v522_v51, %v492_v50  ;;  %v2071_v57 = vpop.f32.mrb[24].mxu0 }
 0x1b9   :  { %v432_v58 = vpop.f32.mrb[25].mxu0  ;;  %v438_v61 = vadd.f32 %v2071_v57, %v2560_v22 }
 0x1ba   :  { %v524_v60 = vadd.f32 %v523_v56, %v493_v54  ;;  %v433_v63 = vadd.f32 %v2560_v22, %v432_v58  ;;  %v2602_v54 = vld [vmem:[#allocation2 + $0x30] ss:$0 sm:$0xff] }
 0x1bb   :  { %v496_v4 = vmax.f32 %v438_v61, 0.0 }
 0x1bc   :  { %v495_v0 = vmax.f32 %v433_v63, 0.0  ;;  %v525_v1 = vadd.f32 %v524_v60, %v494_v59  ;;  %v2074_v2 = vpop.f32.mrb[26].mxu0 }
 0x1bd   :  { %v442_v3 = vpop.f32.mrb[27].mxu0  ;;  %v448_v7 = vadd.f32 %v2074_v2, %v2560_v22 }
 0x1be   :  { %v526_v6 = vadd.f32 %v525_v1, %v495_v0  ;;  %v443_v8 = vadd.f32 %v2560_v22, %v442_v3 }
 0x1bf   :  { %v498_v14 = vmax.f32 %v448_v7, 0.0 }
 0x1c0   :  { %v497_v10 = vmax.f32 %v443_v8, 0.0  ;;  %v527_v11 = vadd.f32 %v526_v6, %v496_v4  ;;  %v2077_v12 = vpop.f32.mrb[28].mxu0 }
 0x1c1   :  { %v452_v13 = vpop.f32.mrb[29].mxu0  ;;  %v458_v16 = vadd.f32 %v2077_v12, %v2560_v22 }
 0x1c2   :  { %v528_v15 = vadd.f32 %v527_v11, %v497_v10  ;;  %v453_v17 = vadd.f32 %v2560_v22, %v452_v13 }
 0x1c3   :  { %v500_v25 = vmax.f32 %v458_v16, 0.0 }
 0x1c4   :  { %v499_v18 = vmax.f32 %v453_v17, 0.0  ;;  %v529_v19 = vadd.f32 %v528_v15, %v498_v14  ;;  %v2080_v20 = vpop.f32.mrb[30].mxu0  ;;  %v2094_v21 = vpop.f32.mrb[0].mxu1 }
 0x1c5   :  { %v462_v23 = vpop.f32.mrb[31].mxu0  ;;  %v801_v24 = vpop.f32.mrb[1].mxu1  ;;  %v468_v27 = vadd.f32 %v2080_v20, %v2560_v22  ;;  %v807_v1 = vadd.f32 %v2094_v21, %v2560_v22 }
 0x1c6   :  { %v530_v26 = vadd.f32 %v529_v19, %v499_v18  ;;  %v463_v28 = vadd.f32 %v2560_v22, %v462_v23  ;;  %v802_v56 = vadd.f32 %v2560_v22, %v801_v24 }
 0x1c7   :  { %v502_v34 = vmax.f32 %v468_v27, 0.0  ;;  %v937_v8 = vmax.f32 %v807_v1, 0.0 }
 0x1c8   :  { %v501_v29 = vmax.f32 %v463_v28, 0.0  ;;  %v531_v30 = vadd.f32 %v530_v26, %v500_v25  ;;  %v2085_v31 = vpop.f32.mrb[32].mxu0  ;;  %v936_v4 = vmax.f32 %v802_v56, 0.0 }
 0x1c9   :  { %v777_v32 = vadd.f32 %v2085_v31, %v2560_v22  ;;  %v771_v33 = vpop.f32.mrb[33].mxu0 }
 0x1ca   :  { %v532_v35 = vadd.f32 %v531_v30, %v501_v29  ;;  %v772_v36 = vadd.f32 %v2560_v22, %v771_v33 }
 0x1cb   :  { %v931_v37 = vmax.f32 %v777_v32, 0.0 }
 0x1cc   :  { %v2596_v38 = vadd.f32 %v532_v35, %v502_v34  ;;  %v930_v39 = vmax.f32 %v772_v36, 0.0  ;;  %v2088_v40 = vpop.f32.mrb[34].mxu0  ;;  %v2097_v41 = vpop.f32.mrb[2].mxu1 }
 0x1cd   :  { %v781_v42 = vpop.f32.mrb[35].mxu0  ;;  %v811_v43 = vpop.f32.mrb[3].mxu1  ;;  %v787_v45 = vadd.f32 %v2088_v40, %v2560_v22  ;;  %v817_v10 = vadd.f32 %v2097_v41, %v2560_v22 }
 0x1ce   :  { %v962_v44 = vadd.f32 %v931_v37, %v930_v39  ;;  %v782_v46 = vadd.f32 %v2560_v22, %v781_v42  ;;  %v812_v6 = vadd.f32 %v2560_v22, %v811_v43 }
 0x1cf   :  { %v933_v50 = vmax.f32 %v787_v45, 0.0  ;;  %v939_v17 = vmax.f32 %v817_v10, 0.0 }
 0x1d0   :  { %v932_v47 = vmax.f32 %v782_v46, 0.0  ;;  %v2091_v48 = vpop.f32.mrb[36].mxu0  ;;  %v938_v12 = vmax.f32 %v812_v6, 0.0 }
 0x1d1   :  { %v791_v49 = vpop.f32.mrb[37].mxu0  ;;  %v797_v52 = vadd.f32 %v2091_v48, %v2560_v22 }
 0x1d2   :  { %v963_v51 = vadd.f32 %v962_v44, %v932_v47  ;;  %v792_v53 = vadd.f32 %v2560_v22, %v791_v49 }
 0x1d3   :  { %v935_v2 = vmax.f32 %v797_v52, 0.0 }
 0x1d4   :  { %v934_v57 = vmax.f32 %v792_v53, 0.0  ;;  %v964_v58 = vadd.f32 %v963_v51, %v933_v50  ;;  %v2100_v59 = vpop.f32.mrb[4].mxu1  ;;  %v2141_v60 = vpop.f32.mrb[38].mxu0 }
 0x1d5   :  { %v821_v61 = vpop.f32.mrb[5].mxu1  ;;  %v2606_v63 = vadd.f32 %v2141_v60, %v2602_v54  ;;  %v2608_v0 = vpop.f32.mrb[39].mxu0  ;;  %v827_v18 = vadd.f32 %v2100_v59, %v2560_v22 }
 0x1d6   :  { %v965_v3 = vadd.f32 %v964_v58, %v934_v57  ;;  %v822_v13 = vadd.f32 %v2560_v22, %v821_v61 }
 0x1d7   :  { %v941_v24 = vmax.f32 %v827_v18, 0.0 }
 0x1d8   :  { %v966_v7 = vadd.f32 %v965_v3, %v935_v2  ;;  %v940_v20 = vmax.f32 %v822_v13, 0.0 }
 0x1da   :  { %v967_v11 = vadd.f32 %v966_v7, %v936_v4 }
 0x1dc   :  { %v968_v14 = vadd.f32 %v967_v11, %v937_v8  ;;  %v2103_v15 = vpop.f32.mrb[6].mxu1 }
 0x1dd   :  { %v831_v16 = vpop.f32.mrb[7].mxu1  ;;  %v837_v26 = vadd.f32 %v2103_v15, %v2560_v22 }
 0x1de   :  { %v969_v19 = vadd.f32 %v968_v14, %v938_v12  ;;  %v832_v23 = vadd.f32 %v2560_v22, %v831_v16 }
 0x1df   :  { %v943_v31 = vmax.f32 %v837_v26, 0.0 }
 0x1e0   :  { %v970_v21 = vadd.f32 %v969_v19, %v939_v17  ;;  %v942_v27 = vmax.f32 %v832_v23, 0.0 }
 0x1e2   :  { %v971_v25 = vadd.f32 %v970_v21, %v940_v20 }
 0x1e4   :  { %v972_v28 = vadd.f32 %v971_v25, %v941_v24  ;;  %v2106_v29 = vpop.f32.mrb[8].mxu1 }
 0x1e5   :  { %v841_v30 = vpop.f32.mrb[9].mxu1  ;;  %v847_v33 = vadd.f32 %v2106_v29, %v2560_v22 }
 0x1e6   :  { %v973_v32 = vadd.f32 %v972_v28, %v942_v27  ;;  %v842_v34 = vadd.f32 %v2560_v22, %v841_v30 }
 0x1e7   :  { %v945_v40 = vmax.f32 %v847_v33, 0.0 }
 0x1e8   :  { %v944_v35 = vmax.f32 %v842_v34, 0.0  ;;  %v974_v36 = vadd.f32 %v973_v32, %v943_v31  ;;  %v2109_v37 = vpop.f32.mrb[10].mxu1 }
 0x1e9   :  { %v851_v39 = vpop.f32.mrb[11].mxu1  ;;  %v857_v42 = vadd.f32 %v2109_v37, %v2560_v22 }
 0x1ea   :  { %v975_v41 = vadd.f32 %v974_v36, %v944_v35  ;;  %v852_v43 = vadd.f32 %v2560_v22, %v851_v39  ;;  %v534_v36 = vrot.slane %v2596_v38, 4 }
 0x1eb   :  { %v947_v48 = vmax.f32 %v857_v42, 0.0  ;;  %v2636_v42 = vadd.f32 %v2602_v54, %v2608_v0 }
 0x1ec   :  { %v946_v44 = vmax.f32 %v852_v43, 0.0  ;;  %v976_v45 = vadd.f32 %v975_v41, %v945_v40  ;;  %v2112_v46 = vpop.f32.mrb[12].mxu1 }
 0x1ed   :  { %v861_v47 = vpop.f32.mrb[13].mxu1  ;;  %v867_v50 = vadd.f32 %v2112_v46, %v2560_v22 }
 0x1ee   :  { %v977_v49 = vadd.f32 %v976_v45, %v946_v44  ;;  %v862_v51 = vadd.f32 %v2560_v22, %v861_v47  ;;  %v535_v47 = vadd.f32 %v534_v36, %v2596_v38  ;;  %v56_v36 = vld [vmem:[#allocation2 + $0xd8] sm:$0xff] }
 0x1ef   :  { %v949_v58 = vmax.f32 %v867_v50, 0.0 }
 0x1f0   :  { %v948_v52 = vmax.f32 %v862_v51, 0.0  ;;  %v978_v53 = vadd.f32 %v977_v49, %v947_v48  ;;  %v2115_v56 = vpop.f32.mrb[14].mxu1 }
 0x1f1   :  { %v871_v57 = vpop.f32.mrb[15].mxu1  ;;  %v877_v60 = vadd.f32 %v2115_v56, %v2560_v22 }
 0x1f2   :  { %v979_v59 = vadd.f32 %v978_v53, %v948_v52  ;;  %v872_v61 = vadd.f32 %v2560_v22, %v871_v57  ;;  %v536_v57 = vrot.slane %v535_v47, 2 }
 0x1f3   :  { %v951_v6 = vmax.f32 %v877_v60, 0.0 }
 0x1f4   :  { %v950_v1 = vmax.f32 %v872_v61, 0.0  ;;  %v980_v2 = vadd.f32 %v979_v59, %v949_v58  ;;  %v2118_v3 = vpop.f32.mrb[16].mxu1  ;;  %v537_v58 = vadd.f32 %v536_v57, %v535_v47 }
 0x1f5   :  { %v881_v4 = vpop.f32.mrb[17].mxu1  ;;  %v887_v8 = vadd.f32 %v2118_v3, %v2560_v22 }
 0x1f6   :  { %v981_v7 = vadd.f32 %v980_v2, %v950_v1  ;;  %v882_v10 = vadd.f32 %v2560_v22, %v881_v4  ;;  %v538_v1 = vrot.slane %v537_v58, 1 }
 0x1f7   :  { %v953_v15 = vmax.f32 %v887_v8, 0.0 }
 0x1f8   :  { %v952_v11 = vmax.f32 %v882_v10, 0.0  ;;  %v982_v12 = vadd.f32 %v981_v7, %v951_v6  ;;  %v2121_v13 = vpop.f32.mrb[18].mxu1  ;;  %v539_v2 = vadd.f32 %v538_v1, %v537_v58 }
 0x1f9   :  { %v891_v14 = vpop.f32.mrb[19].mxu1  ;;  %v897_v17 = vadd.f32 %v2121_v13, %v2560_v22 }
 0x1fa   :  { %v983_v16 = vadd.f32 %v982_v12, %v952_v11  ;;  %v892_v18 = vadd.f32 %v2560_v22, %v891_v14 }
 0x1fb   :  { %v955_v24 = vmax.f32 %v897_v17, 0.0 }
 0x1fc   :  { %v954_v19 = vmax.f32 %v892_v18, 0.0  ;;  %v984_v20 = vadd.f32 %v983_v16, %v953_v15  ;;  %v2124_v21 = vpop.f32.mrb[20].mxu1 }
 0x1fd   :  { %v901_v23 = vpop.f32.mrb[21].mxu1  ;;  %v907_v26 = vadd.f32 %v2124_v21, %v2560_v22 }
 0x1fe   :  { %v985_v25 = vadd.f32 %v984_v20, %v954_v19  ;;  %v902_v27 = vadd.f32 %v2560_v22, %v901_v23 }
 0x1ff   :  { %v957_v32 = vmax.f32 %v907_v26, 0.0 }
 0x200   :  { %v956_v28 = vmax.f32 %v902_v27, 0.0  ;;  %v986_v29 = vadd.f32 %v985_v25, %v955_v24  ;;  %v2127_v30 = vpop.f32.mrb[22].mxu1 }
 0x201   :  { %v911_v31 = vpop.f32.mrb[23].mxu1  ;;  %v917_v34 = vadd.f32 %v2127_v30, %v2560_v22 }
 0x202   :  { %v987_v33 = vadd.f32 %v986_v29, %v956_v28  ;;  %v912_v35 = vadd.f32 %v2560_v22, %v911_v31 }
 0x203   :  { %v959_v43 = vmax.f32 %v917_v34, 0.0 }
 0x204   :  { %v958_v37 = vmax.f32 %v912_v35, 0.0  ;;  %v988_v39 = vadd.f32 %v987_v33, %v957_v32  ;;  %v2130_v40 = vpop.f32.mrb[24].mxu1 }
 0x205   :  { %v921_v41 = vpop.f32.mrb[25].mxu1  ;;  %v927_v45 = vadd.f32 %v2130_v40, %v2560_v22  ;;  %v41_v40 = vld [vmem:[#allocation2 + $0x60] sm:$0xff] }
 0x206   :  { %v989_v44 = vadd.f32 %v988_v39, %v958_v37  ;;  %v922_v46 = vadd.f32 %v2560_v22, %v921_v41  ;;  %v57_v37 = vld [vmem:[#allocation2 + $0xe0] sm:$0xff]  ;;  %v59_v41 = vld [vmem:[#allocation2 + $0xf0] sm:$0xff] }
 0x207   :  { %v961_v53 = vmax.f32 %v927_v45, 0.0  ;;  %v2286_v39 = vpack.c.bf16 %v57_v37, %v56_v36  ;;  %v61_v45 = vld [vmem:[#allocation2 + $0x100] sm:$0xff] }
 0x208   :  { %v960_v48 = vmax.f32 %v922_v46, 0.0  ;;  %v990_v49 = vadd.f32 %v989_v44, %v959_v43  ;;  %v1158_v50 = vpop.f32.mrb[26].mxu1  ;;  %v43_v43 = vld [vmem:[#allocation2 + $0x70] sm:$0xff]  ;;  %v60_v44 = vld [vmem:[#allocation2 + $0xf8] sm:$0xff] }
 0x209   :  { %v1162_v51 = vadd.f32 %v1158_v50, %v2636_v42  ;;  %v2152_v52 = vpop.f32.mrb[27].mxu1  ;;  %v2294_v47 = vpack.c.bf16 %v61_v45, %v60_v44  ;;  %v62_v50 = vld [vmem:[#allocation2 + $0x108] sm:$0xff] }
 0x20a   :  { %v991_v56 = vadd.f32 %v990_v49, %v960_v48  ;;  %v44_v48 = vld [vmem:[#allocation2 + $0x78] sm:$0xff]  ;;  %v45_v49 = vld [vmem:[#allocation2 + $0x80] sm:$0xff] }
 0x20b   :  { %2329 = vtanh.f32 %v1162_v51  ;;  %v63_v51 = vld [vmem:[#allocation2 + $0x110] sm:$0xff]  ;;  %v2296_v52 = vpack.c.bf16 %v45_v49, %v44_v48 }
 0x20c   :  { %v992_v54 = vadd.f32 %v991_v56, %v961_v53  ;;  %v2298_v53 = vpack.c.bf16 %v63_v51, %v62_v50 }
 0x20e   :  { %v993_v0 = vrot.slane %v992_v54, 4 }
 0x210   :  { %v994_v59 = vadd.f32 %v993_v0, %v992_v54 }
 0x212   :  { %v995_v60 = vrot.slane %v994_v59, 2 }
 0x214   :  { %v996_v61 = vadd.f32 %v995_v60, %v994_v59  ;;  %v46_v60 = vld [vmem:[#allocation2 + $0x88] sm:$0xff] }
 0x215   :  { %v2330_v22 = vpop.eup %2329 }
 0x216   :  { %2162 = vmatmul.mubr.msk.f32.vlgmr.msra.gmra.mrb[40].mxu0 %vm1007_vm2, %v2330_v22  ;;  %v997_v38 = vrot.slane %v996_v61, 1  ;;  %v64_v22 = vld [vmem:[#allocation2 + $0x118] sm:$0xff] }
 0x217   :  { %2258 = vmatpush3.bf16.msra.mxu0 %v2490_v55  ;;  %2183 = vmatprep.mubr.msk.f32.mxu0 %vm2397_vm3, %v2398_v9 }
 0x218   :  { %2259 = vmatprep.subr.bf16.mxu0 %v2396_v5  ;;  %v998_v3 = vadd.f32 %v997_v38, %v996_v61  ;;  %v47_v61 = vld [vmem:[#allocation2 + $0x90] sm:$0xff]  ;;  %v65_v38 = vld [vmem:[#allocation2 + $0x120] sm:$0xff] }
 0x219   :  { %v2300_v1 = vpack.c.bf16 %v47_v61, %v46_v60 }
 0x21a   :  { %v2647_v4 = vsel %vm999_vm4, %v539_v2, %v998_v3  ;;  %v2302_v2 = vpack.c.bf16 %v65_v38, %v64_v22  ;;  %v48_v3 = vld [vmem:[#allocation2 + $0x98] sm:$0xff] }
 0x21b   :  { %2261 = vmatpush3.bf16.msra.mxu0 %v2496_v62 }
 0x21c   :  { %2268 = vmatprep.subr.bf16.mxu0 %v2396_v5 }
 0x2e9   :  { %v1233_v6 = vpop.f32.mrb[40].mxu0 }
 0x2ea   :  { %v1238_v7 = vrot.slane %v1233_v6, 6  ;;  %v2163_v8 = vpop.f32.mrb[41].mxu0  ;;  %v49_v6 = vld [vmem:[#allocation2 + $0xa0] sm:$0xff] }
 0x2eb   :  { %v66_v8 = vld [vmem:[#allocation2 + $0x128] sm:$0xff] }
 0x2ec   :  { %v1240_v10 = vadd.f32 %v1238_v7, %v2636_v42  ;;  %v2304_v7 = vpack.c.bf16 %v49_v6, %v48_v3 }
 0x2ee   :  { %2331 = vtanh.f32 %v1240_v10  ;;  %v67_v10 = vld [vmem:[#allocation2 + $0x130] sm:$0xff] }
 0x2f8   :  { %v2332_v11 = vpop.eup %2331 }
 0x2f9   :  { %v1243_v12 = vrot.slane %v2332_v11, 2  ;;  %v2306_v11 = vpack.c.bf16 %v67_v10, %v66_v8 }
 0x2fb   :  { %2173 = vmatmul.mubr.msk.f32.vlgmr.msra.gmra.mrb[28].mxu1 %vm1007_vm2, %v1243_v12  ;;  %v50_v12 = vld [vmem:[#allocation2 + $0xa8] sm:$0xff] }
 0x2fc   :  { %2264 = vmatpush3.bf16.msra.mxu1 %v2490_v55  ;;  %2194 = vmatprep.mubr.msk.f32.mxu1 %vm2397_vm3, %v2398_v9 }
 0x2fd   :  { %2265 = vmatprep.subr.bf16.mxu1 %v2396_v5 }
 0x300   :  { %2267 = vmatpush3.bf16.msra.mxu1 %v2496_v62 }
 0x301   :  { %2274 = vmatprep.subr.bf16.mxu1 %v2396_v5 }
 0x3ce   :  { %v1312_v13 = vpop.f32.mrb[28].mxu1 }
 0x3cf   :  { %v1317_v14 = vrot.slane %v1312_v13, 4  ;;  %v2174_v15 = vpop.f32.mrb[29].mxu1  ;;  %v51_v13 = vld [vmem:[#allocation2 + $0xb0] sm:$0xff] }
 0x3d0   :  { %v2308_v15 = vpack.c.bf16 %v51_v13, %v50_v12 }
 0x3d1   :  { %v1319_v16 = vadd.f32 %v1317_v14, %v2636_v42  ;;  %v68_v14 = vld [vmem:[#allocation2 + $0x138] sm:$0xff] }
 0x3d3   :  { %2333 = vtanh.f32 %v1319_v16  ;;  %v69_v16 = vld [vmem:[#allocation2 + $0x140] sm:$0xff] }
 0x3dd   :  { %v2334_v17 = vpop.eup %2333 }
 0x3de   :  { %v1322_v18 = vrot.slane %v2334_v17, 4  ;;  %v52_v17 = vld [vmem:[#allocation2 + $0xb8] sm:$0xff] }
 0x3e0   :  { %2184 = vmatmul.mubr.msk.f32.vlgmr.msra.gmra.mrb[42].mxu0 %vm1007_vm2, %v1322_v18  ;;  %v53_v18 = vld [vmem:[#allocation2 + $0xc0] sm:$0xff] }
 0x3e1   :  { %2270 = vmatpush3.bf16.msra.mxu0 %v2490_v55  ;;  %2205 = vmatprep.mubr.msk.f32.mxu0 %vm2397_vm3, %v2398_v9 }
 0x3e2   :  { %2271 = vmatprep.subr.bf16.mxu0 %v2396_v5 }
 0x3e5   :  { %2273 = vmatpush3.bf16.msra.mxu0 %v2496_v62 }
 0x3e6   :  { %2280 = vmatprep.subr.bf16.mxu0 %v2396_v5 }
 0x4b3   :  { %v1391_v19 = vpop.f32.mrb[42].mxu0 }
 0x4b4   :  { %v1396_v20 = vrot.slane %v1391_v19, 2  ;;  %v2185_v21 = vpop.f32.mrb[43].mxu0  ;;  %v2310_v19 = vpack.c.bf16 %v69_v16, %v68_v14 }
 0x4b5   :  { %v71_v21 = vld [vmem:[#allocation2 + $0x150] sm:$0xff] }
 0x4b6   :  { %v1398_v23 = vadd.f32 %v1396_v20, %v2636_v42  ;;  %v70_v20 = vld [vmem:[#allocation2 + $0x148] sm:$0xff] }
 0x4b8   :  { %2335 = vtanh.f32 %v1398_v23  ;;  %v2312_v23 = vpack.c.bf16 %v53_v18, %v52_v17 }
 0x4c2   :  { %v2336_v24 = vpop.eup %2335 }
 0x4c3   :  { %v1401_v25 = vrot.slane %v2336_v24, 6  ;;  %v2314_v24 = vpack.c.bf16 %v71_v21, %v70_v20 }
 0x4c5   :  { %2195 = vmatmul.mubr.msk.f32.vlgmr.msra.gmra.mrb[30].mxu1 %vm1007_vm2, %v1401_v25  ;;  %v54_v25 = vld [vmem:[#allocation2 + $0xc8] sm:$0xff] }
 0x4c6   :  { %2276 = vmatpush3.bf16.msra.mxu1 %v2490_v55  ;;  %2216 = vmatprep.mubr.msk.f32.mxu1 %vm2397_vm3, %v2398_v9 }
 0x4c7   :  { %2277 = vmatprep.subr.bf16.mxu1 %v2396_v5 }
 0x4ca   :  { %2279 = vmatpush3.bf16.msra.mxu1 %v2496_v62 }
 0x4cb   :  { %2287 = vmatprep.subr.bf16.mxu1 %v2286_v39 }
 0x598   :  { %v1470_v26 = vpop.f32.mrb[30].mxu1 }
 0x599   :  { %v1474_v27 = vadd.f32 %v1470_v26, %v2606_v63  ;;  %v2196_v28 = vpop.f32.mrb[31].mxu1  ;;  %v55_v26 = vld [vmem:[#allocation2 + $0xd0] sm:$0xff] }
 0x59b   :  { %2337 = vtanh.f32 %v1474_v27  ;;  %v2316_v27 = vpack.c.bf16 %v55_v26, %v54_v25 }
 0x5a5   :  { %v2338_v29 = vpop.eup %2337 }
 0x5a6   :  { %2206 = vmatmul.mubr.msk.f32.vlgmr.msra.gmra.mrb[44].mxu0 %vm1007_vm2, %v2338_v29 }
 0x5a7   :  { %2282 = vmatpush3.bf16.msra.mxu0 %v2490_v55  ;;  %2227 = vmatprep.mubr.msk.f32.mxu0 %vm2397_vm3, %v2398_v9  ;;  %v40_v55 = vld [vmem:[#allocation2 + $0x58] sm:$0xff]  ;;  %v58_v9 = vld [vmem:[#allocation2 + $0xe8] sm:$0xff] }
 0x5a8   :  { %2283 = vmatprep.subr.bf16.mxu0 %v2396_v5  ;;  %v2288_v5 = vpack.c.bf16 %v41_v40, %v40_v55  ;;  %v2290_v42 = vpack.c.bf16 %v59_v41, %v58_v9 }
 0x5ab   :  { %2285 = vmatpush3.bf16.msra.mxu0 %v2496_v62  ;;  %v42_v62 = vld [vmem:[#allocation2 + $0x68] sm:$0xff] }
 0x5ac   :  { %v2292_v46 = vpack.c.bf16 %v43_v43, %v42_v62 }
 0x679   :  { %v1545_v30 = vpop.f32.mrb[44].mxu0 }
 0x67a   :  { %v1550_v31 = vrot.slane %v1545_v30, 6  ;;  %v2207_v32 = vpop.f32.mrb[45].mxu0 }
 0x67c   :  { %v1552_v33 = vadd.f32 %v1550_v31, %v2606_v63 }
 0x67e   :  { %2339 = vtanh.f32 %v1552_v33 }
 0x688   :  { %v2340_v34 = vpop.eup %2339 }
 0x689   :  { %v1555_v35 = vrot.slane %v2340_v34, 2 }
 0x68b   :  { %2217 = vmatmul.mubr.msk.f32.vlgmr.msra.gmra.mrb[32].mxu1 %vm1007_vm2, %v1555_v35  ;;  %v1883_v35 = vld [vmem:[#allocation2 + $0x158] ss:$0 sm:$0xff] }
 0x68c   :  { %2289 = vmatpush3.bf16.msra.mxu1 %v2288_v5 }
 0x68d   :  { %2291 = vmatprep.subr.bf16.mxu1 %v2290_v42 }
 0x690   :  { %2293 = vmatpush3.bf16.msra.mxu1 %v2292_v46 }
 0x691   :  { %2295 = vmatprep.subr.bf16.mxu1 %v2294_v47 }
 0x694   :  { %2297 = vmatpush3.bf16.msra.mxu1 %v2296_v52 }
 0x695   :  { %2299 = vmatprep.subr.bf16.mxu1 %v2298_v53 }
 0x698   :  { %2301 = vmatpush3.bf16.msra.mxu1 %v2300_v1 }
 0x699   :  { %2303 = vmatprep.subr.bf16.mxu1 %v2302_v2 }
 0x69c   :  { %2305 = vmatpush3.bf16.msra.mxu1 %v2304_v7 }
 0x69d   :  { %2307 = vmatprep.subr.bf16.mxu1 %v2306_v11 }
 0x6a0   :  { %2309 = vmatpush3.bf16.msra.mxu1 %v2308_v15 }
 0x6a1   :  { %2311 = vmatprep.subr.bf16.mxu1 %v2310_v19 }
 0x6a4   :  { %2313 = vmatpush3.bf16.msra.mxu1 %v2312_v23 }
 0x6a5   :  { %2315 = vmatprep.subr.bf16.mxu1 %v2314_v24 }
 0x6a8   :  { %2317 = vmatpush3.bf16.msra.mxu1 %v2316_v27 }
 0x75e   :  { %v1624_v56 = vpop.f32.mrb[32].mxu1 }
 0x75f   :  { %v1629_v57 = vrot.slane %v1624_v56, 4  ;;  %v2218_v54 = vpop.f32.mrb[33].mxu1 }
 0x761   :  { %v1631_v0 = vadd.f32 %v1629_v57, %v2606_v63 }
 0x763   :  { %2341 = vtanh.f32 %v1631_v0 }
 0x76d   :  { %v2342_v58 = vpop.eup %2341 }
 0x76e   :  { %v1634_v59 = vrot.slane %v2342_v58, 4 }
 0x770   :  { %2228 = vmatmul.mubr.msk.f32.vlgmr.msra.gmra.mrb[46].mxu0 %vm1007_vm2, %v1634_v59 }
 0x843   :  { %v1703_v28 = vpop.f32.mrb[46].mxu0 }
 0x844   :  { %v1708_v29 = vrot.slane %v1703_v28, 2  ;;  %v2229_v30 = vpop.f32.mrb[47].mxu0 }
 0x846   :  { %v1710_v31 = vadd.f32 %v1708_v29, %v2606_v63 }
 0x848   :  { %2343 = vtanh.f32 %v1710_v31 }
 0x852   :  { %v2344_v32 = vpop.eup %2343 }
 0x853   :  { %v1713_v33 = vrot.slane %v2344_v32, 6 }
 0x855   :  { %1783 = vmatprep.mubr.f32.mxu1 %v1713_v33 }
 0x856   :  { %1784 = vmatmul.mubr.f32.vlgmr.msra.gmra.mrb[34].mxu1 %v2647_v4 }
 0x929   :  { %v2028_v34 = vpop.f32.mrb[34].mxu1 }
 0x92a   :  { %v2029_v36 = vpop.f32.mrb[35].mxu1 }
 0x92b   :  { %v2030_v37 = vadd.f32 %v2029_v36, %v2028_v34 }
 0x92d   :  { %v1786_v55 = vadd.f32 %v2030_v37, %v1883_v35 }
 0x92f   :  { %1789 = vst [vmem:[#allocation5] sm:$0x3] %v1786_v55 }
 0x930   :  { %2378 = shalt.err (!%p2375_p12)
}
 0x931   :  { %s2379_s9 = scalar_lea.hbm %s2702_s3, 32 }
 0x932   :  { %p2380_p13 = scmp.ne.s32.totalorder %s2702_s3, %s2379_s9  ;;  %p2383_p0 = scmp.lt.u32.totalorder %s2379_s9, %s2702_s3 }
 0x934   :  { %p2385_p1 = pnand %p2383_p0, %p2380_p13 }
 0x936   :  { %2388 = shalt.err (!%p2385_p1)
}
 0x937   :  { %1799 = dma.vmem_to_hbm [thread:$0]  %s1797_s5, 32, %s2702_s3, [#allocation4]  }
 0x938   :  { %2391 = dma.done.wait [#allocation4], 32  }
 0x939   :  { %2392 = vsyncadd [#allocation4], 4294967264 }
 0x93a   :  { %1803 = vsyncpa [#allocation3], 1 }
 0x93b   :  { %1804 = vsyncpa [#allocation4], 1 }

</bundles_post_ra>
